<compile_context>
chip_gen: v5e
topology: v5e:2x2
jax: 0.10.0
libtpu: 0.0.40
codegen_flags: <defaults>
</compile_context>

<pallas_src>
import functools

import jax
import jax.numpy as jnp
from jax.experimental import pallas as pl
from jax.experimental.pallas import tpu as pltpu

BN_EPS = 1e-5
ACT_DTYPE = jnp.bfloat16          # inter-layer activation dtype


def _round_up(x, m):
    return (x + m - 1) // m * m


def _pick_tiles(M, K, N):
    """Adaptive, alignment-safe tile selection (all blocks multiples of (8,128))."""
    if M > 128:
        TM = 256
        Mp = _round_up(M, TM)
    else:
        Mp = _round_up(M, 8)
        TM = Mp
    Kp = _round_up(K, 128)
    if Kp <= 2304:
        TK = Kp
    else:
        TK = 128
        for cand in (2304, 2048, 1536, 1152, 1024, 896, 768, 640, 512, 384, 256):
            if Kp % cand == 0:
                TK = cand
                break
    Np = _round_up(N, 128)
    if Np <= 512:
        TN = Np
    elif Np % 512 == 0:
        TN = 512
    elif Np % 256 == 0:
        TN = 256
    else:
        TN = 128
    return Mp, Kp, Np, TM, TK, TN


# -----------------------------------------------------------------------------
# Pallas kernel 1: fused matmul (bf16 in, fp32 acc) + affine (folded BN) + act
# -----------------------------------------------------------------------------
def _mm_kernel(x_ref, w_ref, s_ref, b_ref, o_ref, acc_ref, *, act, nk):
    @pl.when(pl.program_id(2) == 0)
    def _():
        acc_ref[...] = jnp.zeros_like(acc_ref)

    acc_ref[...] += jnp.dot(x_ref[...], w_ref[...],
                            preferred_element_type=jnp.float32)

    @pl.when(pl.program_id(2) == nk - 1)
    def _():
        y = acc_ref[...] * s_ref[...] + b_ref[...]
        if act == "relu":
            y = jnp.maximum(y, 0.0)
        elif act == "sigmoid":
            y = jax.nn.sigmoid(y)
        o_ref[...] = y.astype(o_ref.dtype)


_MM_CACHE = {}


def _mm_fn(Mp, Kp, Np, TM, TK, TN, act, out_dtype):
    key = (Mp, Kp, Np, TM, TK, TN, act, jnp.dtype(out_dtype).name)
    fn = _MM_CACHE.get(key)
    if fn is None:
        nk = Kp // TK
        fn = jax.jit(pl.pallas_call(
            functools.partial(_mm_kernel, act=act, nk=nk),
            out_shape=jax.ShapeDtypeStruct((Mp, Np), out_dtype),
            grid_spec=pltpu.PrefetchScalarGridSpec(
                num_scalar_prefetch=0,
                grid=(Mp // TM, Np // TN, nk),
                in_specs=[
                    pl.BlockSpec((TM, TK), lambda i, j, k: (i, k)),
                    pl.BlockSpec((TK, TN), lambda i, j, k: (k, j)),
                    pl.BlockSpec((1, TN), lambda i, j, k: (0, j)),
                    pl.BlockSpec((1, TN), lambda i, j, k: (0, j)),
                ],
                out_specs=pl.BlockSpec((TM, TN), lambda i, j, k: (i, j)),
                scratch_shapes=[pltpu.VMEM((TM, TN), jnp.float32)],
            ),
            compiler_params=pltpu.CompilerParams(
                dimension_semantics=("parallel", "parallel", "arbitrary")),
        ))
        _MM_CACHE[key] = fn
    return fn


def matmul_affine_act(x, w, scale, bias, act="none", out_dtype=ACT_DTYPE):
    M, K = x.shape
    K2, N = w.shape
    assert K2 == K, (K2, K)
    Mp, Kp, Np, TM, TK, TN = _pick_tiles(M, K, N)

    xp = x.astype(jnp.bfloat16)
    if (Mp, Kp) != (M, K):
        xp = jnp.pad(xp, ((0, Mp - M), (0, Kp - K)))
    wp = w.astype(jnp.bfloat16)
    if (Kp, Np) != (K, N):                       # only small weights ever hit this
        wp = jnp.pad(wp, ((0, Kp - K), (0, Np - N)))
    sp = scale.astype(jnp.float32)
    bp = bias.astype(jnp.float32)
    if Np != N:
        sp = jnp.pad(sp, (0, Np - N))
        bp = jnp.pad(bp, (0, Np - N))
    sp = sp.reshape(1, Np)
    bp = bp.reshape(1, Np)

    out = _mm_fn(Mp, Kp, Np, TM, TK, TN, act, out_dtype)(xp, wp, sp, bp)
    if (Mp, Np) != (M, N):
        out = out[:M, :N]
    return out


# -----------------------------------------------------------------------------
# Pallas kernel 2: 2x2 max-pool (single kernel over the stacked 4 corner views)
# -----------------------------------------------------------------------------
def _pool_kernel(x_ref, o_ref):
    o_ref[...] = jnp.maximum(jnp.maximum(x_ref[0], x_ref[1]),
                             jnp.maximum(x_ref[2], x_ref[3]))


_POOL_CACHE = {}


def maxpool2x2(x):
    n, h, w, c = x.shape
    ho, wo = h // 2, w // 2
    m = n * ho * wo
    views = jnp.stack([x[:, i::2, j::2, :].reshape(m, c)
                       for i in range(2) for j in range(2)], axis=0)
    mp = _round_up(m, 8)
    if mp != m:
        views = jnp.pad(views, ((0, 0), (0, mp - m), (0, 0)))
    key = (mp, c, views.dtype.name)
    fn = _POOL_CACHE.get(key)
    if fn is None:
        fn = jax.jit(pl.pallas_call(
            _pool_kernel,
            out_shape=jax.ShapeDtypeStruct((mp, c), views.dtype),
            grid_spec=pltpu.PrefetchScalarGridSpec(
                num_scalar_prefetch=0,
                grid=(1,),
                in_specs=[pl.BlockSpec((4, mp, c), lambda i: (0, 0, 0))],
                out_specs=pl.BlockSpec((mp, c), lambda i: (0, 0)),
            ),
        ))
        _POOL_CACHE[key] = fn
    out = fn(views)
    return out[:m].reshape(n, ho, wo, c)


# -----------------------------------------------------------------------------
# Pallas kernel 3: ConvLSTM cell pointwise update (gx + gh -> h_next, c_next)
# -----------------------------------------------------------------------------
def _lstm_cell_kernel(gx_ref, gh_ref, c_ref, h_ref, cn_ref, *, hd):
    g = gx_ref[...].astype(jnp.float32) + gh_ref[...].astype(jnp.float32)
    i = jax.nn.sigmoid(g[:, 0 * hd:1 * hd])
    f = jax.nn.sigmoid(g[:, 1 * hd:2 * hd])
    o = jax.nn.sigmoid(g[:, 2 * hd:3 * hd])
    gg = jnp.tanh(g[:, 3 * hd:4 * hd])
    c_next = f * c_ref[...] + i * gg
    cn_ref[...] = c_next
    h_ref[...] = (o * jnp.tanh(c_next)).astype(h_ref.dtype)


_LSTM_CACHE = {}


def lstm_pointwise(gx, gh, c_prev):
    m, four_hd = gx.shape
    hd = four_hd // 4
    if m > 256:
        mp, tm = _round_up(m, 256), 256
    else:
        mp = _round_up(m, 8)
        tm = mp
    if mp != m:
        pad = ((0, mp - m), (0, 0))
        gx, gh, c_prev = jnp.pad(gx, pad), jnp.pad(gh, pad), jnp.pad(c_prev, pad)
    key = (mp, tm, hd)
    fn = _LSTM_CACHE.get(key)
    if fn is None:
        fn = jax.jit(pl.pallas_call(
            functools.partial(_lstm_cell_kernel, hd=hd),
            out_shape=(jax.ShapeDtypeStruct((mp, hd), ACT_DTYPE),
                       jax.ShapeDtypeStruct((mp, hd), jnp.float32)),
            grid_spec=pltpu.PrefetchScalarGridSpec(
                num_scalar_prefetch=0,
                grid=(mp // tm,),
                in_specs=[pl.BlockSpec((tm, 4 * hd), lambda i: (i, 0)),
                          pl.BlockSpec((tm, 4 * hd), lambda i: (i, 0)),
                          pl.BlockSpec((tm, hd), lambda i: (i, 0))],
                out_specs=(pl.BlockSpec((tm, hd), lambda i: (i, 0)),
                           pl.BlockSpec((tm, hd), lambda i: (i, 0))),
            ),
            compiler_params=pltpu.CompilerParams(
                dimension_semantics=("parallel",)),
        ))
        _LSTM_CACHE[key] = fn
    h, c = fn(gx, gh, c_prev)
    return h[:m], c[:m]


# -----------------------------------------------------------------------------
# Layer wrappers (plain-JAX glue around the Pallas kernels)
# -----------------------------------------------------------------------------
def conv3x3(x, p, act="relu"):
    """3x3 conv, stride 1, pad 1 (+ fused folded-BN affine / act) on NHWC input."""
    # TODO(synk): im2col is materialized in JAX (bf16) rather than fused into the
    #             matmul index_map (implicit GEMM) — acceptable at these sizes.
    n, h, w, c = x.shape
    xp = jnp.pad(x, ((0, 0), (1, 1), (1, 1), (0, 0)))
    cols = jnp.concatenate(
        [xp[:, dh:dh + h, dw:dw + w, :] for dh in range(3) for dw in range(3)],
        axis=-1).reshape(n * h * w, 9 * c)
    y = matmul_affine_act(cols, p["w"], p["scale"], p["bias"], act=act)
    return y.reshape(n, h, w, -1)


def conv1x1(x, p, act="none", out_dtype=ACT_DTYPE):
    n, h, wd, c = x.shape
    y = matmul_affine_act(x.reshape(n * h * wd, c), p["w"], p["scale"], p["bias"],
                          act=act, out_dtype=out_dtype)
    return y.reshape(n, h, wd, -1)


def tconv2x2(x, p):
    """ConvTranspose2d(kernel=2, stride=2): matmul to (kh,kw,Cout) then scatter."""
    n, h, wd, cin = x.shape
    cout = p["w"].shape[1] // 4
    y = matmul_affine_act(x.reshape(n * h * wd, cin), p["w"], p["scale"], p["bias"],
                          act="none")
    y = y.reshape(n, h, wd, 2, 2, cout)
    return y.transpose(0, 1, 3, 2, 4, 5).reshape(n, 2 * h, 2 * wd, cout)


def up_block(x, skip, p):
    """upsample(in, out, cat): transpose-conv 2x, concat skip, double_conv."""
    u = tconv2x2(x, p["t"])
    cat = jnp.concatenate([u, skip.astype(u.dtype)], axis=-1)
    return conv3x3(conv3x3(cat, p["c1"]), p["c2"])


def convlstm_forward(seq, layer_params):
    """seq: (T, B, h, w, C) time-major.  Returns last time step of last layer."""
    t_len, b_sz, hh, ww, _ = seq.shape
    cur = seq
    for lp in layer_params:
        hd = lp["hidden"]
        # Input (W_x) contribution for ALL timesteps in a single batched matmul.
        x_all = cur.reshape(t_len * b_sz, hh, ww, -1)
        gx_all = conv3x3(x_all, {"w": lp["wx"], "scale": lp["ones"],
                                 "bias": lp["b"]}, act="none")
        gx_all = gx_all.reshape(t_len, b_sz * hh * ww, 4 * hd)

        h = jnp.zeros((b_sz, hh, ww, hd), ACT_DTYPE)
        c = jnp.zeros((b_sz * hh * ww, hd), jnp.float32)
        outs = []
        for t in range(t_len):
            gh = conv3x3(h, {"w": lp["wh"], "scale": lp["ones"],
                             "bias": lp["zeros"]}, act="none")
            gh = gh.reshape(b_sz * hh * ww, 4 * hd)
            h_flat, c = lstm_pointwise(gx_all[t], gh, c)
            h = h_flat.reshape(b_sz, hh, ww, hd)
            outs.append(h)
        cur = jnp.stack(outs, axis=0)
    # TODO(synk): reference indexes lstm[0][-1]; interpreted as "last time step
    #             of the last ConvLSTM layer" (time-major convention).
    return cur[-1]


# -----------------------------------------------------------------------------
# Parameter initialization (deterministic, synthetic; BN folded + bf16 once here)
# -----------------------------------------------------------------------------
class _KeyGen:
    def __init__(self, key):
        self._key = key

    def __call__(self):
        self._key, k = jax.random.split(self._key)
        return k


def _init_conv_bn(kg, cin, cout):
    """3x3 conv (+ eval-mode BatchNorm folded into scale/bias), weight in bf16."""
    std = (2.0 / (9 * cin)) ** 0.5
    # weight stored as (kh*kw*Cin, Cout), matching the im2col column order.
    w = (jax.random.normal(kg(), (9 * cin, cout), jnp.float32) * std).astype(jnp.bfloat16)
    conv_b = jax.random.normal(kg(), (cout,), jnp.float32) * 0.01
    gamma = jnp.ones((cout,), jnp.float32)
    beta = jnp.zeros((cout,), jnp.float32)
    mean = jnp.zeros((cout,), jnp.float32)
    var = jnp.ones((cout,), jnp.float32)
    s = gamma * jax.lax.rsqrt(var + BN_EPS)
    b = beta + s * (conv_b - mean)
    return {"w": w, "scale": s, "bias": b}


def _init_tconv2x2(kg, cin, cout):
    std = (1.0 / cin) ** 0.5
    # stored as (Cin, kh*kw*Cout); PyTorch layout would be (Cin, Cout, 2, 2).
    w = (jax.random.normal(kg(), (cin, 4 * cout), jnp.float32) * std).astype(jnp.bfloat16)
    b = jax.random.normal(kg(), (cout,), jnp.float32) * 0.01
    return {"w": w, "scale": jnp.ones((4 * cout,), jnp.float32), "bias": jnp.tile(b, 4)}


def _init_lstm_layer(kg, cin, hd):
    std = (1.0 / (9 * (cin + hd))) ** 0.5
    wx = (jax.random.normal(kg(), (9 * cin, 4 * hd), jnp.float32) * std).astype(jnp.bfloat16)
    wh = (jax.random.normal(kg(), (9 * hd, 4 * hd), jnp.float32) * std).astype(jnp.bfloat16)
    b = jax.random.normal(kg(), (4 * hd,), jnp.float32) * 0.01
    return {"hidden": hd, "wx": wx, "wh": wh, "b": b,
            "ones": jnp.ones((4 * hd,), jnp.float32),
            "zeros": jnp.zeros((4 * hd,), jnp.float32)}


def init_params(key, in_channels, out_channels, n_layers):
    kg = _KeyGen(key)
    c = lambda ci, co: _init_conv_bn(kg, ci, co)
    P = {}
    # VGG16-bn encoder, sliced exactly as in the reference module:
    #   block3 gets only two of the three 256-convs; block4 = conv(256->256),
    #   pool, conv(256->512); block5 = conv,conv,pool; bottleneck = 3x conv,pool.
    P["b1c1"], P["b1c2"] = c(in_channels, 64), c(64, 64)
    P["b2c1"], P["b2c2"] = c(64, 128), c(128, 128)
    P["b3c1"], P["b3c2"] = c(128, 256), c(256, 256)
    P["b4c1"], P["b4c2"] = c(256, 256), c(256, 512)
    P["b5c1"], P["b5c2"] = c(512, 512), c(512, 512)
    P["btc1"], P["btc2"], P["btc3"] = c(512, 512), c(512, 512), c(512, 512)
    P["dbt_c1"], P["dbt_c2"] = c(512, 1024), c(1024, 1024)

    def up(cin, cout, cat_ch):
        return {"t": _init_tconv2x2(kg, cin, cout),
                "c1": c(cat_ch, cout), "c2": c(cout, cout)}

    P["up1"] = up(1024, 512, 1024)
    P["up2"] = up(512, 256, 768)
    P["up3"] = up(256, 128, 384)
    P["up4"] = up(128, 64, 192)
    P["up5"] = up(64, 32, 96)
    P["out"] = {
        "w": (jax.random.normal(kg(), (32, out_channels), jnp.float32)
              * (1.0 / 32) ** 0.5).astype(jnp.bfloat16),
        "scale": jnp.ones((out_channels,), jnp.float32),
        "bias": jnp.zeros((out_channels,), jnp.float32),
    }

    # ConvLSTM at the bridge: input_dim = hidden_dim = 1024 (bottleneck channels)
    hd = 1024
    P["lstm_layers"] = [_init_lstm_layer(kg, hd, hd) for _ in range(n_layers)]
    return P


# -----------------------------------------------------------------------------
# Full forward pass (loc == 'bridge')
# -----------------------------------------------------------------------------
def vgg16_unet_lstm_forward(x, P):
    """x: (B, T, C, H, W) -> (B, out_channels, H, W)."""
    B, T, Cin, H, W = x.shape
    # unbind over T; encoder is applied frame-wise => batch frames together.
    xn = jnp.transpose(x, (1, 0, 3, 4, 2)).reshape(T * B, H, W, Cin).astype(ACT_DTYPE)

    x1 = conv3x3(conv3x3(xn, P["b1c1"]), P["b1c2"])                        # H,    64
    x2 = conv3x3(conv3x3(maxpool2x2(x1), P["b2c1"]), P["b2c2"])            # H/2,  128
    x3 = conv3x3(conv3x3(maxpool2x2(x2), P["b3c1"]), P["b3c2"])            # H/4,  256
    x4 = conv3x3(maxpool2x2(conv3x3(x3, P["b4c1"])), P["b4c2"])            # H/8,  512
    x5 = maxpool2x2(conv3x3(conv3x3(x4, P["b5c1"]), P["b5c2"]))            # H/16, 512
    bt = maxpool2x2(conv3x3(conv3x3(conv3x3(x5, P["btc1"]), P["btc2"]), P["btc3"]))
    bt = conv3x3(conv3x3(bt, P["dbt_c1"]), P["dbt_c2"])                    # H/32, 1024

    hb, wb = H // 32, W // 32
    seq = bt.reshape(T, B, hb, wb, -1)
    lstm = convlstm_forward(seq, P["lstm_layers"])                         # (B, hb, wb, 1024)

    # Skip connections use the LAST frame's features (Python loop-variable
    # leakage in the reference forward).
    def last(f):
        return f.reshape(T, B, *f.shape[1:])[-1]

    x6 = up_block(lstm, last(x5), P["up1"])
    x7 = up_block(x6, last(x4), P["up2"])
    x8 = up_block(x7, last(x3), P["up3"])
    x9 = up_block(x8, last(x2), P["up4"])
    x10 = up_block(x9, last(x1), P["up5"])
    out = conv1x1(x10, P["out"], act="sigmoid", out_dtype=jnp.float32)     # (B, H, W, Cout)
    return jnp.transpose(out, (0, 3, 1, 2))                                # NCHW like PyTorch


if __name__ == "__main__":
    key = jax.random.PRNGKey(0)
    B, T, C, H, W = 1, 2, 3, 32, 32          # H, W must be multiples of 32
    out_channels, n_layers = 2, 1
    kp_, kx_ = jax.random.split(key)
    params = init_params(kp_, C, out_channels, n_layers)
    x = jax.random.normal(kx_, (B, T, C, H, W), jnp.float32)

    out = vgg16_unet_lstm_forward(x, params)
    out = jax.block_until_ready(out)

    assert out.shape == (B, out_channels, H, W), out.shape
    assert bool(jnp.all(jnp.isfinite(out)))
    assert bool(jnp.all((out >= 0.0) & (out <= 1.0)))   # sigmoid output
    print("KERNEL_OK")
</pallas_src>

<mosaic_0001>
module attributes {stable_mosaic.version = 11 : i64} {
  func.func @_mm_kernel(%arg0: i32, %arg1: i32, %arg2: i32, %arg3: memref<256x128xbf16, #tpu.memory_space<vmem>>, %arg4: memref<128x128xbf16, #tpu.memory_space<vmem>>, %arg5: memref<1x128xf32, #tpu.memory_space<vmem>>, %arg6: memref<1x128xf32, #tpu.memory_space<vmem>>, %arg7: memref<256x128xbf16, #tpu.memory_space<vmem>>, %arg8: memref<256x128xf32, #tpu.memory_space<vmem>>) attributes {dimension_semantics = [#tpu.dimension_semantics<parallel>, #tpu.dimension_semantics<parallel>, #tpu.dimension_semantics<arbitrary>], iteration_bounds = array<i64: 8, 1, 1>, scalar_prefetch = 0 : i64, scratch_operands = 1 : i64, tpu.core_type = #tpu.core_type<tc>, window_params = [{transform_indices = @transform_0, window_bounds = array<i64: 256, 128>}, {transform_indices = @transform_1, window_bounds = array<i64: 128, 128>}, {transform_indices = @transform_2, window_bounds = array<i64: 1, 128>}, {transform_indices = @transform_3, window_bounds = array<i64: 1, 128>}, {transform_indices = @transform_4, window_bounds = array<i64: 256, 128>}]} {
    %c0_i32 = arith.constant 0 : i32
    %0 = arith.cmpi eq, %arg2, %c0_i32 : i32
    %1 = arith.extui %0 : i1 to i32
    %c0_i32_0 = arith.constant 0 : i32
    %2 = arith.cmpi ne, %1, %c0_i32_0 : i32
    scf.if %2 {
      %cst_10 = arith.constant 0.000000e+00 : f32
      %12 = vector.broadcast %cst_10 : f32 to vector<256x128xf32>
      %c0_11 = arith.constant 0 : index
      %c0_12 = arith.constant 0 : index
      %13 = vector.load %arg8[%c0_11, %c0_12] : memref<256x128xf32, #tpu.memory_space<vmem>>, vector<256x128xf32>
      tpu.vector_store %arg8[%c0_11, %c0_12], %12 {strides = array<i32>} : memref<256x128xf32, #tpu.memory_space<vmem>>, vector<256x128xf32>,
    } else {
    }
    %c0 = arith.constant 0 : index
    %c0_1 = arith.constant 0 : index
    %3 = vector.load %arg8[%c0, %c0_1] : memref<256x128xf32, #tpu.memory_space<vmem>>, vector<256x128xf32>
    %c0_2 = arith.constant 0 : index
    %c0_3 = arith.constant 0 : index
    %4 = vector.load %arg3[%c0_2, %c0_3] : memref<256x128xbf16, #tpu.memory_space<vmem>>, vector<256x128xbf16>
    %c0_4 = arith.constant 0 : index
    %c0_5 = arith.constant 0 : index
    %5 = vector.load %arg4[%c0_4, %c0_5] : memref<128x128xbf16, #tpu.memory_space<vmem>>, vector<128x128xbf16>
    %cst = arith.constant dense<0.000000e+00> : vector<256x128xf32>
    %6 = tpu.matmul %4, %5, %cst {dimension_numbers = #tpu.dot_dimension_numbers<[1], [0], [0], [1], [0, 0, 1, 1], [], []>} : vector<256x128xbf16>, vector<128x128xbf16>, vector<256x128xf32> -> vector<256x128xf32>
    %7 = arith.addf %3, %6 : vector<256x128xf32>
    %c0_6 = arith.constant 0 : index
    %c0_7 = arith.constant 0 : index
    %8 = vector.load %arg8[%c0_6, %c0_7] : memref<256x128xf32, #tpu.memory_space<vmem>>, vector<256x128xf32>
    tpu.vector_store %arg8[%c0_6, %c0_7], %7 {strides = array<i32>} : memref<256x128xf32, #tpu.memory_space<vmem>>, vector<256x128xf32>,
    %c0_i32_8 = arith.constant 0 : i32
    %9 = arith.cmpi eq, %arg2, %c0_i32_8 : i32
    %10 = arith.extui %9 : i1 to i32
    %c0_i32_9 = arith.constant 0 : i32
    %11 = arith.cmpi ne, %10, %c0_i32_9 : i32
    scf.if %11 {
      %c0_10 = arith.constant 0 : index
      %c0_11 = arith.constant 0 : index
      %12 = vector.load %arg8[%c0_10, %c0_11] : memref<256x128xf32, #tpu.memory_space<vmem>>, vector<256x128xf32>
      %c0_12 = arith.constant 0 : index
      %c0_13 = arith.constant 0 : index
      %13 = vector.load %arg5[%c0_12, %c0_13] : memref<1x128xf32, #tpu.memory_space<vmem>>, vector<1x128xf32>
      %14 = vector.broadcast %13 : vector<1x128xf32> to vector<256x128xf32>
      %15 = arith.mulf %12, %14 : vector<256x128xf32>
      %c0_14 = arith.constant 0 : index
      %c0_15 = arith.constant 0 : index
      %16 = vector.load %arg6[%c0_14, %c0_15] : memref<1x128xf32, #tpu.memory_space<vmem>>, vector<1x128xf32>
      %17 = vector.broadcast %16 : vector<1x128xf32> to vector<256x128xf32>
      %18 = arith.addf %15, %17 : vector<256x128xf32>
      %cst_16 = arith.constant 0.000000e+00 : f32
      %19 = vector.broadcast %cst_16 : f32 to vector<256x128xf32>
      %20 = arith.maximumf %18, %19 : vector<256x128xf32>
      %21 = arith.truncf %20 : vector<256x128xf32> to vector<256x128xbf16>
      %c0_17 = arith.constant 0 : index
      %c0_18 = arith.constant 0 : index
      %22 = vector.load %arg7[%c0_17, %c0_18] : memref<256x128xbf16, #tpu.memory_space<vmem>>, vector<256x128xbf16>
      tpu.vector_store %arg7[%c0_17, %c0_18], %21 {strides = array<i32>} : memref<256x128xbf16, #tpu.memory_space<vmem>>, vector<256x128xbf16>,
    } else {
    }
    return
  }
  func.func @transform_0(%arg0: i32, %arg1: i32, %arg2: i32) -> (i32, i32) {
    %c0_i32 = arith.constant 0 : i32
    return %arg0, %arg2 : i32, i32
  }
  func.func @transform_1(%arg0: i32, %arg1: i32, %arg2: i32) -> (i32, i32) {
    %c0_i32 = arith.constant 0 : i32
    return %arg2, %arg1 : i32, i32
  }
  func.func @transform_2(%arg0: i32, %arg1: i32, %arg2: i32) -> (i32, i32) {
    %c0_i32 = arith.constant 0 : i32
    %c0_i32_0 = arith.constant 0 : i32
    return %c0_i32, %arg1 : i32, i32
  }
  func.func @transform_3(%arg0: i32, %arg1: i32, %arg2: i32) -> (i32, i32) {
    %c0_i32 = arith.constant 0 : i32
    %c0_i32_0 = arith.constant 0 : i32
    return %c0_i32, %arg1 : i32, i32
  }
  func.func @transform_4(%arg0: i32, %arg1: i32, %arg2: i32) -> (i32, i32) {
    %c0_i32 = arith.constant 0 : i32
    return %arg0, %arg1 : i32, i32
  }
}

</mosaic_0001>

<bundles_post_ra>
// kernel: tpu_custom_call.1
= control target key start
LH: loop header
LB: loop body
LE: loop exit
PB: predicated region body
PF: predicated region fallthrough
CT: control target
= control target key end

     0   :  { %s1845_s0 = inlined_call_operand.hbm [shape: bf16[2048,128], index: 0, kind: input, shape index: {}]   ;;  %s1846_s1 = inlined_call_operand.hbm [shape: bf16[128,128], index: 1, kind: input, shape index: {}]   ;;  %s1847_s2 = inlined_call_operand.vmem [shape: f32[1,128], index: 2, kind: input, shape index: {}]   ;;  %s1848_s3 = inlined_call_operand.vmem [shape: f32[1,128], index: 3, kind: input, shape index: {}]   ;;  %s1849_s4 = inlined_call_operand.hbm [shape: bf16[2048,128], index: 4, kind: output, shape index: {}]  }
   0x1   :  { %1853 = sst [smem:[#allocation13_spill]] %s1846_s1 }
   0x2   :  { %9 = vsyncpa [#allocation4], 0 }
   0x3   :  { %11 = vsyncpa [#allocation4 + $0x1], 0 }
   0x4   :  { %12 = vsyncpa [#allocation7], 0 }
   0x5   :  { %13 = vsyncpa [#allocation5], 0 }
   0x6   :  { %15 = vsyncpa [#allocation5 + $0x1], 0  ;;  %s1577_s15 = smov 0   ;;  %s1579_s16 = smov 0  }
   0x7   :  { %s1581_s17 = smov 0   ;;  %s1583_s18 = smov 0  }
   0x8   :  { %s1585_s19 = smov 0   ;;  %s1587_s20 = smov 0  }
   0x9 LB: > { %s1060_s21 = sadd.s32 4294967295, %s1545_s20   ;;  %s1061_s22 = sadd.s32 4294967294, %s1545_s20   ;;  %s1545_s20 = sphi %s1587_s20, %s21_s20   ;;  %s1541_s19 = sphi %s1585_s19, %s1870_s19   ;;  %s1537_s18 = sphi %s1583_s18, %s1869_s18   ;;  %s1533_s17 = sphi %s1581_s17, %s1868_s17   ;;  %s1529_s16 = sphi %s1579_s16, %s1867_s16   ;;  %s1525_s15 = sphi %s1577_s15, %s1866_s15  }
   0xa   : > { %p62_p0 = scmp.ne.s32.totalorder %s1529_s16, %s1525_s15  ;;  %p1611_p1 = scmp.eq.s32.totalorder %s1060_s21, 0 }
   0xb   : > { %p1615_p2 = scmp.eq.s32.totalorder %s1060_s21, 7  ;;  %p174_p3 = scmp.eq.s32.totalorder %s1061_s22, 7 }
   0xc   : > { %p1621_p4 = por %p1611_p1, %p62_p0  ;;  %p1062_p5 = scmp.ge.s32.totalorder %s1545_s20, 1 }
   0xd   : > { %p1626_p6 = por %p174_p3, %p62_p0  ;;  %p181_p7 = scmp.lt.s32.totalorder %s1545_s20, 9 }
   0xe   : > { %s1858_s1 = sld [smem:[#allocation13_spill]]  ;;  %s1547_s5 = smov [#allocation6]  }
   0xf   : > { %p1634_p8 = pnand %p1062_p5, %p181_p7  ;;  %s198_s6 = sshll.u32 %s1547_s5, 4  ;;  %s199_s6 = int_to_ptr.vmem [resolvable:$true] %s198_s6 }
  0x10   : > { %s1850_s7 = smov 64   ;;  %s1851_s8 = smov 4  }
  0x11   : > { %p1328_p9 = pneg %p1634_p8  ;;  %s40_s9 = sadd.s32 1, %s1541_s19 }
  0x12   : > { %p42_p11 = scmp.ge.s32.totalorder %s40_s9, 8  ;;  %s49_s10 = sadd.s32 1, %s1533_s17 }
  0x13   : > { %p1329_p10 = pnand %p1328_p9, %p1611_p1  ;;  %p56_p12 = scmp.ne.s32.totalorder %s1533_s17, %s1529_s16 }
  0x14   : > { %s196_s29 = sshll.u32 %s1858_s1, 4  ;;  %p57_p13 = scmp.eq.s32.totalorder %s1545_s20, 0  ;;  %s197_s29 = int_to_ptr.hbm [resolvable:$true] %s196_s29 }
  0x15   : > { %1331 = dma.hbm_to_vmem [thread:$0]  (!%p1329_p10), %s197_s29, 1024, %s199_s6, [#allocation7], %s1850_s7, %s1850_s7, %s1851_s8  }
  0x16   : > { %s1872_s9 = smov (%p42_p11, %s40_s9), 0  ;;  %p1652_p0 = por %p57_p13, %p56_p12 }
  0x17   : > { %1860 = sst [smem:[#allocation12_spill]] %s1872_s9  ;;  %p1658_p3 = por %p1615_p2, %p56_p12 }
  0x18   : > { %s44_s13 = ssub.s32 %s1541_s19, %s1872_s9  ;;  %p1341_p5 = scmp.lt.s32.totalorder %s1545_s20, 8 }
  0x19   : > { %p47_p7 = scmp.eq.s32.totalorder %s44_s13, 0  ;;  %s224_s14 = sand.u32 1, %s1533_s17  }
  0x1a   : > { %s1067_s21 = sshll.u32 %s224_s14, 7  ;;  %s1175_s27 = sshll.u32 %s1541_s19, 7 }
  0x1b   : > { %s1667_s22 = scalar_select %p47_p7, %s1533_s17, %s49_s10  }
  0x1c   : > { %s234_s5 = scalar_lea.hbm %s1845_s0, %s1175_s27  ;;  %s228_s6 = scalar_lea.vmem [#allocation3], %s1067_s21 }
  0x1d   : > { %s237_s7 = sshll.u32 %s228_s6, 4  ;;  %s235_s24 = sshll.u32 %s234_s5, 4  ;;  %s238_s7 = int_to_ptr.vmem [resolvable:$true] %s237_s7  ;;  %s236_s24 = int_to_ptr.hbm [resolvable:$true] %s235_s24 }
  0x1e   : > { %p1333_p2 = pnand %p1341_p5, %p1652_p0  ;;  %s225_s8 = scalar_lea.sflag [#allocation4], %s224_s14 }
  0x1f   : > { %s1863_s1 = smov 4   ;;  %s1864_s9 = smov 64  }
  0x20   : > { %1335 = dma.hbm_to_vmem [thread:$0]  (!%p1333_p2), %s236_s24, 2048, %s238_s7, %s225_s8, %s1864_s9, %s1864_s9, %s1863_s1  }
  0x21   : > { %249 = sbr.rel (%p1634_p8) target bundleno = 275 (0x113), region = 36  ;;  %s1681_s10 = sand.u32 (!%p1634_p8), 1, %s1529_s16  }
  0x22   : > { %s1071_s13 = sshll.u32 (!%p1634_p8), %s1681_s10, 7  ;;  %s252_s21 = scalar_lea.sflag (!%p1634_p8), [#allocation4], %s1681_s10 }
  0x23   : > { %s1687_s11 = scalar_lea.vmem (!%p1634_p8), [#allocation3], %s1071_s13 }
  0x26   : > { %1512 = dma.done.wait (%p1621_p4), %s252_s21, 2048  }
  0x27   : > { %1514 = vsyncadd (%p1621_p4), %s252_s21, 4294965248 }
  0x28   : > { %1516 = dma.done.wait (%p1611_p1), [#allocation7], 1024  }
  0x29   : > { %1518 = vsyncadd (%p1611_p1), [#allocation7], 4294966272  ;;  %v1199_v0 = vld [vmem:[#allocation6 + $0x38] sm:$0xff]  ;;  %v1198_v1 = vld [vmem:[#allocation6 + $0x30] sm:$0xff]  ;;  %s1739_s7 = scalar_lea.vmem [#allocation8], %s1071_s13  ;;  %s1200_s8 = sshll.u32 %s1537_s18, 7 }
  0x2a   : > { %561 = vmatpush.bf16.msra.mxu0 %v1199_v0  ;;  %1296 = vmatpush.bf16.msra.mxu1 %v1199_v0  ;;  %v1197_v2 = vld [vmem:[#allocation6 + $0x28] sm:$0xff]  ;;  %v1196_v3 = vld [vmem:[#allocation6 + $0x20] sm:$0xff]  ;;  %v1195_v4 = vld [vmem:[#allocation6 + $0x18] sm:$0xff]  ;;  %s930_s27 = scalar_lea.hbm %s1849_s4, %s1200_s8  ;;  %s931_s18 = sshll.u32 %s1739_s7, 4  ;;  %s932_s18 = int_to_ptr.vmem [resolvable:$true] %s931_s18 }
  0x2b   : > { %1297 = vmatpush.bf16.msra.mxu2 %v1199_v0  ;;  %1298 = vmatpush.bf16.msra.mxu3 %v1199_v0  ;;  %v1194_v5 = vld [vmem:[#allocation6 + $0x10] sm:$0xff]  ;;  %v1193_v6 = vld [vmem:[#allocation6 + $0x8] sm:$0xff]  ;;  %v1192_v7 = vld [vmem:[#allocation6] sm:$0xff]  ;;  %s933_s28 = sshll.u32 %s930_s27, 4  ;;  %s918_s29 = scalar_lea.sflag [#allocation5], %s1681_s10  ;;  %s934_s28 = int_to_ptr.hbm [resolvable:$true] %s933_s28 }
  0x2c   : > { %v1176_v8 = vld [vmem:[%s1687_s11] sm:$0xff]  ;;  %v1177_v12 = vld [vmem:[%s1687_s11 + $0x8] sm:$0xff]  ;;  %v1178_v16 = vld [vmem:[%s1687_s11 + $0x10] sm:$0xff]  ;;  %s1473_s5 = sshra.s32 %s934_s28, 4  ;;  %s1479_s21 = scalar_lea.hbm %s1849_s4, 1024  ;;  %s1474_s5 = int_to_ptr.hbm [resolvable:$true] %s1473_s5 }
  0x2d   : > { %v1180_v9 = vld [vmem:[%s1687_s11 + $0x20] sm:$0xff]  ;;  %v1181_v13 = vld [vmem:[%s1687_s11 + $0x28] sm:$0xff]  ;;  %v1182_v17 = vld [vmem:[%s1687_s11 + $0x30] sm:$0xff]  ;;  %s1475_s6 = scalar_lea.hbm %s1474_s5, 128  ;;  %p1480_p9 = scmp.lt.s32.totalorder %s1474_s5, %s1849_s4 }
  0x2e   : > { %562 = vmatpush.bf16.msra.mxu0 %v1198_v1  ;;  %1299 = vmatpush.bf16.msra.mxu1 %v1198_v1  ;;  %v1184_v10 = vld [vmem:[%s1687_s11 + $0x40] sm:$0xff]  ;;  %v1185_v14 = vld [vmem:[%s1687_s11 + $0x48] sm:$0xff]  ;;  %v1186_v18 = vld [vmem:[%s1687_s11 + $0x50] sm:$0xff]  ;;  %p1476_p1 = scmp.ne.s32.totalorder %s1474_s5, %s1475_s6  ;;  %p1481_p10 = scmp.lt.s32.totalorder %s1479_s21, %s1475_s6 }
  0x2f   : > { %1300 = vmatpush.bf16.msra.mxu2 %v1198_v1  ;;  %1301 = vmatpush.bf16.msra.mxu3 %v1198_v1  ;;  %v1188_v11 = vld [vmem:[%s1687_s11 + $0x60] sm:$0xff]  ;;  %v1189_v15 = vld [vmem:[%s1687_s11 + $0x68] sm:$0xff]  ;;  %v1190_v19 = vld [vmem:[%s1687_s11 + $0x70] sm:$0xff] }
  0x30   : > { %v1179_v20 = vld [vmem:[%s1687_s11 + $0x18] sm:$0xff]  ;;  %v1716_v26 = vld [vmem:[%s1847_s2] ss:$0 sm:$0xff]  ;;  %p1477_p4 = pnand %p1476_p1, %p1658_p3  ;;  %p1482_p11 = por %p1481_p10, %p1480_p9 }
  0x31   : > { %v1183_v21 = vld [vmem:[%s1687_s11 + $0x38] sm:$0xff]  ;;  %v1722_v28 = vld [vmem:[%s1848_s3] ss:$0 sm:$0xff] }
  0x32   : > { %563 = vmatpush.bf16.msra.mxu0 %v1197_v2  ;;  %1302 = vmatpush.bf16.msra.mxu1 %v1197_v2  ;;  %v1187_v22 = vld [vmem:[%s1687_s11 + $0x58] sm:$0xff]  ;;  %p1478_p8 = pneg %p1477_p4 }
  0x33   : > { %1303 = vmatpush.bf16.msra.mxu2 %v1197_v2  ;;  %1304 = vmatpush.bf16.msra.mxu3 %v1197_v2  ;;  %v1191_v23 = vld [vmem:[%s1687_s11 + $0x78] sm:$0xff] }
  0x34   : > { %p1483_p12 = pnand %p1482_p11, %p1478_p8 }
  0x36   : > { %564 = vmatpush.bf16.msra.mxu0 %v1196_v3  ;;  %1305 = vmatpush.bf16.msra.mxu1 %v1196_v3 }
  0x37   : > { %1306 = vmatpush.bf16.msra.mxu2 %v1196_v3  ;;  %1307 = vmatpush.bf16.msra.mxu3 %v1196_v3 }
  0x3a   : > { %565 = vmatpush.bf16.msra.mxu0 %v1195_v4  ;;  %1308 = vmatpush.bf16.msra.mxu1 %v1195_v4 }
  0x3b   : > { %1309 = vmatpush.bf16.msra.mxu2 %v1195_v4  ;;  %1310 = vmatpush.bf16.msra.mxu3 %v1195_v4 }
  0x3e   : > { %566 = vmatpush.bf16.msra.mxu0 %v1194_v5  ;;  %1311 = vmatpush.bf16.msra.mxu1 %v1194_v5 }
  0x3f   : > { %1312 = vmatpush.bf16.msra.mxu2 %v1194_v5  ;;  %1313 = vmatpush.bf16.msra.mxu3 %v1194_v5 }
  0x42   : > { %567 = vmatpush.bf16.msra.mxu0 %v1193_v6  ;;  %1314 = vmatpush.bf16.msra.mxu1 %v1193_v6 }
  0x43   : > { %1315 = vmatpush.bf16.msra.mxu2 %v1193_v6  ;;  %1316 = vmatpush.bf16.msra.mxu3 %v1193_v6 }
  0x46   : > { %568 = vmatpush.bf16.msra.mxu0 %v1192_v7  ;;  %1317 = vmatpush.bf16.msra.mxu1 %v1192_v7 }
  0x47   : > { %1318 = vmatpush.bf16.msra.mxu2 %v1192_v7  ;;  %1319 = vmatpush.bf16.msra.mxu3 %v1192_v7 }
  0x49   : > { %569 = vmatmul.bf16.vlgmr.msra.gmra.mxu0 %v1176_v8  ;;  %589 = vmatmul.bf16.vlgmr.msra.gmra.mxu1 %v1180_v9 }
  0x4a   : > { %609 = vmatmul.bf16.vlgmr.msra.gmra.mxu2 %v1184_v10  ;;  %629 = vmatmul.bf16.vlgmr.msra.gmra.mxu3 %v1188_v11 }
  0x59   : > { %574 = vmatmul.bf16.gmra.mxu0 %v1177_v12  ;;  %594 = vmatmul.bf16.gmra.mxu1 %v1181_v13 }
  0x5a   : > { %614 = vmatmul.bf16.gmra.mxu2 %v1185_v14  ;;  %634 = vmatmul.bf16.gmra.mxu3 %v1189_v15 }
  0x69   : > { %579 = vmatmul.bf16.gmra.mxu0 %v1178_v16  ;;  %599 = vmatmul.bf16.gmra.mxu1 %v1182_v17 }
  0x6a   : > { %619 = vmatmul.bf16.gmra.mxu2 %v1186_v18  ;;  %639 = vmatmul.bf16.gmra.mxu3 %v1190_v19 }
  0x79   : > { %584 = vmatmul.bf16.gmra.mxu0 %v1179_v20  ;;  %604 = vmatmul.bf16.gmra.mxu1 %v1183_v21 }
  0x7a   : > { %624 = vmatmul.bf16.gmra.mxu2 %v1187_v22  ;;  %644 = vmatmul.bf16.gmra.mxu3 %v1191_v23 }
  0xc6   : > { %v570_v24 = vpop.f32.mrf.mxu0  ;;  %v590_v25 = vpop.f32.mrf.mxu1 }
  0xc7   : > { %v753_v27 = vmul.f32 %v1716_v26, %v570_v24  ;;  %v761_v29 = vmul.f32 %v1716_v26, %v590_v25 }
  0xc9   : > { %v789_v34 = vadd.f32 %v1722_v28, %v753_v27  ;;  %v797_v35 = vadd.f32 %v1722_v28, %v761_v29 }
  0xcb   : > { %v821_v42 = vmax.f32 %v789_v34, 0.0  ;;  %v829_v43 = vmax.f32 %v797_v35, 0.0 }
  0xcd   : > { %v610_v30 = vpop.f32.mrf.mxu2  ;;  %v630_v31 = vpop.f32.mrf.mxu3 }
  0xce   : > { %v572_v32 = vpop.f32.mrf.mxu0  ;;  %v592_v33 = vpop.f32.mrf.mxu1  ;;  %v769_v40 = vmul.f32 %v1716_v26, %v610_v30  ;;  %v777_v41 = vmul.f32 %v1716_v26, %v630_v31 }
  0xcf   : > { %v754_v36 = vmul.f32 %v1716_v26, %v572_v32  ;;  %v762_v37 = vmul.f32 %v1716_v26, %v592_v33 }
  0xd0   : > { %v805_v50 = vadd.f32 %v1722_v28, %v769_v40  ;;  %v813_v51 = vadd.f32 %v1722_v28, %v777_v41 }
  0xd1   : > { %v790_v38 = vadd.f32 %v1722_v28, %v754_v36  ;;  %v798_v39 = vadd.f32 %v1722_v28, %v762_v37 }
  0xd2   : > { %v837_v58 = vmax.f32 %v805_v50, 0.0  ;;  %v845_v59 = vmax.f32 %v813_v51, 0.0 }
  0xd3   : > { %v822_v44 = vmax.f32 %v790_v38, 0.0  ;;  %v830_v45 = vmax.f32 %v798_v39, 0.0 }
  0xd5   : > { %v1204_v46 = vpack.c.bf16 %v822_v44, %v821_v42  ;;  %v1224_v47 = vpack.c.bf16 %v830_v45, %v829_v43  ;;  %v612_v48 = vpop.f32.mrf.mxu2  ;;  %v632_v49 = vpop.f32.mrf.mxu3 }
  0xd6   : > { %v770_v52 = vmul.f32 %v1716_v26, %v612_v48  ;;  %v778_v53 = vmul.f32 %v1716_v26, %v632_v49  ;;  %v575_v54 = vpop.f32.mrf.mxu0  ;;  %v595_v55 = vpop.f32.mrf.mxu1 }
  0xd7   : > { %1205 = vst [vmem:[%s1739_s7] sm:$0xff] %v1204_v46   ;;  %v755_v62 = vmul.f32 %v1716_v26, %v575_v54  ;;  %v763_v63 = vmul.f32 %v1716_v26, %v595_v55 }
  0xd8   : > { %1284 = vst [vmem:[%s1739_s7 + $0x20] sm:$0xff] %v1224_v47   ;;  %v806_v56 = vadd.f32 %v1722_v28, %v770_v52  ;;  %v814_v57 = vadd.f32 %v1722_v28, %v778_v53 }
  0xd9   : > { %v791_v6 = vadd.f32 %v1722_v28, %v755_v62  ;;  %v799_v7 = vadd.f32 %v1722_v28, %v763_v63 }
  0xda   : > { %v838_v60 = vmax.f32 %v806_v56, 0.0  ;;  %v846_v61 = vmax.f32 %v814_v57, 0.0 }
  0xdb   : > { %v823_v14 = vmax.f32 %v791_v6, 0.0  ;;  %v831_v15 = vmax.f32 %v799_v7, 0.0 }
  0xdc   : > { %v1244_v0 = vpack.c.bf16 %v838_v60, %v837_v58  ;;  %v1264_v1 = vpack.c.bf16 %v846_v61, %v845_v59 }
  0xdd   : > { %v615_v2 = vpop.f32.mrf.mxu2  ;;  %v635_v3 = vpop.f32.mrf.mxu3 }
  0xde   : > { %1288 = vst [vmem:[%s1739_s7 + $0x40] sm:$0xff] %v1244_v0   ;;  %v577_v4 = vpop.f32.mrf.mxu0  ;;  %v597_v5 = vpop.f32.mrf.mxu1  ;;  %v771_v12 = vmul.f32 %v1716_v26, %v615_v2  ;;  %v779_v13 = vmul.f32 %v1716_v26, %v635_v3 }
  0xdf   : > { %1292 = vst [vmem:[%s1739_s7 + $0x60] sm:$0xff] %v1264_v1   ;;  %v756_v8 = vmul.f32 %v1716_v26, %v577_v4  ;;  %v764_v9 = vmul.f32 %v1716_v26, %v597_v5 }
  0xe0   : > { %v807_v22 = vadd.f32 %v1722_v28, %v771_v12  ;;  %v815_v23 = vadd.f32 %v1722_v28, %v779_v13 }
  0xe1   : > { %v792_v10 = vadd.f32 %v1722_v28, %v756_v8  ;;  %v800_v11 = vadd.f32 %v1722_v28, %v764_v9 }
  0xe2   : > { %v839_v32 = vmax.f32 %v807_v22, 0.0  ;;  %v847_v33 = vmax.f32 %v815_v23, 0.0 }
  0xe3   : > { %v824_v16 = vmax.f32 %v792_v10, 0.0  ;;  %v832_v17 = vmax.f32 %v800_v11, 0.0 }
  0xe5   : > { %v1209_v18 = vpack.c.bf16 %v824_v16, %v823_v14  ;;  %v1229_v19 = vpack.c.bf16 %v832_v17, %v831_v15  ;;  %v617_v20 = vpop.f32.mrf.mxu2  ;;  %v637_v21 = vpop.f32.mrf.mxu3 }
  0xe6   : > { %v772_v24 = vmul.f32 %v1716_v26, %v617_v20  ;;  %v780_v25 = vmul.f32 %v1716_v26, %v637_v21  ;;  %v580_v27 = vpop.f32.mrf.mxu0  ;;  %v600_v29 = vpop.f32.mrf.mxu1 }
  0xe7   : > { %1281 = vst [vmem:[%s1739_s7 + $0x8] sm:$0xff] %v1209_v18   ;;  %v757_v36 = vmul.f32 %v1716_v26, %v580_v27  ;;  %v765_v37 = vmul.f32 %v1716_v26, %v600_v29 }
  0xe8   : > { %1285 = vst [vmem:[%s1739_s7 + $0x28] sm:$0xff] %v1229_v19   ;;  %v808_v30 = vadd.f32 %v1722_v28, %v772_v24  ;;  %v816_v31 = vadd.f32 %v1722_v28, %v780_v25 }
  0xe9   : > { %v793_v44 = vadd.f32 %v1722_v28, %v757_v36  ;;  %v801_v45 = vadd.f32 %v1722_v28, %v765_v37 }
  0xea   : > { %v840_v34 = vmax.f32 %v808_v30, 0.0  ;;  %v848_v35 = vmax.f32 %v816_v31, 0.0 }
  0xeb   : > { %v825_v52 = vmax.f32 %v793_v44, 0.0  ;;  %v833_v53 = vmax.f32 %v801_v45, 0.0 }
  0xec   : > { %v1249_v38 = vpack.c.bf16 %v840_v34, %v839_v32  ;;  %v1269_v39 = vpack.c.bf16 %v848_v35, %v847_v33 }
  0xed   : > { %v620_v40 = vpop.f32.mrf.mxu2  ;;  %v640_v41 = vpop.f32.mrf.mxu3 }
  0xee   : > { %1289 = vst [vmem:[%s1739_s7 + $0x48] sm:$0xff] %v1249_v38   ;;  %v582_v42 = vpop.f32.mrf.mxu0  ;;  %v602_v43 = vpop.f32.mrf.mxu1  ;;  %v773_v50 = vmul.f32 %v1716_v26, %v620_v40  ;;  %v781_v51 = vmul.f32 %v1716_v26, %v640_v41 }
  0xef   : > { %1293 = vst [vmem:[%s1739_s7 + $0x68] sm:$0xff] %v1269_v39   ;;  %v758_v46 = vmul.f32 %v1716_v26, %v582_v42  ;;  %v766_v47 = vmul.f32 %v1716_v26, %v602_v43 }
  0xf0   : > { %v809_v60 = vadd.f32 %v1722_v28, %v773_v50  ;;  %v817_v61 = vadd.f32 %v1722_v28, %v781_v51 }
  0xf1   : > { %v794_v48 = vadd.f32 %v1722_v28, %v758_v46  ;;  %v802_v49 = vadd.f32 %v1722_v28, %v766_v47 }
  0xf2   : > { %v841_v4 = vmax.f32 %v809_v60, 0.0  ;;  %v849_v5 = vmax.f32 %v817_v61, 0.0 }
  0xf3   : > { %v826_v54 = vmax.f32 %v794_v48, 0.0  ;;  %v834_v55 = vmax.f32 %v802_v49, 0.0 }
  0xf5   : > { %v1214_v56 = vpack.c.bf16 %v826_v54, %v825_v52  ;;  %v1234_v57 = vpack.c.bf16 %v834_v55, %v833_v53  ;;  %v622_v58 = vpop.f32.mrf.mxu2  ;;  %v642_v59 = vpop.f32.mrf.mxu3 }
  0xf6   : > { %v774_v62 = vmul.f32 %v1716_v26, %v622_v58  ;;  %v782_v63 = vmul.f32 %v1716_v26, %v642_v59  ;;  %v585_v0 = vpop.f32.mrf.mxu0  ;;  %v605_v1 = vpop.f32.mrf.mxu1 }
  0xf7   : > { %1282 = vst [vmem:[%s1739_s7 + $0x10] sm:$0xff] %v1214_v56   ;;  %v759_v8 = vmul.f32 %v1716_v26, %v585_v0  ;;  %v767_v9 = vmul.f32 %v1716_v26, %v605_v1 }
  0xf8   : > { %1286 = vst [vmem:[%s1739_s7 + $0x30] sm:$0xff] %v1234_v57   ;;  %v810_v2 = vadd.f32 %v1722_v28, %v774_v62  ;;  %v818_v3 = vadd.f32 %v1722_v28, %v782_v63 }
  0xf9   : > { %v795_v16 = vadd.f32 %v1722_v28, %v759_v8  ;;  %v803_v17 = vadd.f32 %v1722_v28, %v767_v9 }
  0xfa   : > { %v842_v6 = vmax.f32 %v810_v2, 0.0  ;;  %v850_v7 = vmax.f32 %v818_v3, 0.0 }
  0xfb   : > { %v827_v24 = vmax.f32 %v795_v16, 0.0  ;;  %v835_v25 = vmax.f32 %v803_v17, 0.0 }
  0xfc   : > { %v1254_v10 = vpack.c.bf16 %v842_v6, %v841_v4  ;;  %v1274_v11 = vpack.c.bf16 %v850_v7, %v849_v5 }
  0xfd   : > { %v625_v12 = vpop.f32.mrf.mxu2  ;;  %v645_v13 = vpop.f32.mrf.mxu3 }
  0xfe   : > { %1290 = vst [vmem:[%s1739_s7 + $0x50] sm:$0xff] %v1254_v10   ;;  %v587_v14 = vpop.f32.mrf.mxu0  ;;  %v607_v15 = vpop.f32.mrf.mxu1  ;;  %v775_v22 = vmul.f32 %v1716_v26, %v625_v12  ;;  %v783_v23 = vmul.f32 %v1716_v26, %v645_v13 }
  0xff   : > { %1294 = vst [vmem:[%s1739_s7 + $0x70] sm:$0xff] %v1274_v11   ;;  %v760_v18 = vmul.f32 %v1716_v26, %v587_v14  ;;  %v768_v19 = vmul.f32 %v1716_v26, %v607_v15 }
 0x100   : > { %v811_v34 = vadd.f32 %v1722_v28, %v775_v22  ;;  %v819_v35 = vadd.f32 %v1722_v28, %v783_v23 }
 0x101   : > { %v796_v20 = vadd.f32 %v1722_v28, %v760_v18  ;;  %v804_v21 = vadd.f32 %v1722_v28, %v768_v19 }
 0x102   : > { %v843_v40 = vmax.f32 %v811_v34, 0.0  ;;  %v851_v41 = vmax.f32 %v819_v35, 0.0 }
 0x103   : > { %v828_v27 = vmax.f32 %v796_v20, 0.0  ;;  %v836_v29 = vmax.f32 %v804_v21, 0.0 }
 0x105   : > { %v1219_v30 = vpack.c.bf16 %v828_v27, %v827_v24  ;;  %v1239_v31 = vpack.c.bf16 %v836_v29, %v835_v25  ;;  %v627_v32 = vpop.f32.mrf.mxu2  ;;  %v647_v33 = vpop.f32.mrf.mxu3 }
 0x106   : > { %v776_v36 = vmul.f32 %v1716_v26, %v627_v32  ;;  %v784_v37 = vmul.f32 %v1716_v26, %v647_v33 }
 0x107   : > { %1283 = vst [vmem:[%s1739_s7 + $0x18] sm:$0xff] %v1219_v30  }
 0x108   : > { %1287 = vst [vmem:[%s1739_s7 + $0x38] sm:$0xff] %v1239_v31   ;;  %v812_v38 = vadd.f32 %v1722_v28, %v776_v36  ;;  %v820_v39 = vadd.f32 %v1722_v28, %v784_v37 }
 0x10a   : > { %v844_v42 = vmax.f32 %v812_v38, 0.0  ;;  %v852_v26 = vmax.f32 %v820_v39, 0.0 }
 0x10c   : > { %v1259_v43 = vpack.c.bf16 %v844_v42, %v843_v40  ;;  %v1279_v44 = vpack.c.bf16 %v852_v26, %v851_v41 }
 0x10e   : > { %1291 = vst [vmem:[%s1739_s7 + $0x58] sm:$0xff] %v1259_v43  }
 0x10f   : > { %1295 = vst [vmem:[%s1739_s7 + $0x78] sm:$0xff] %v1279_v44  }
 0x110   : > { %1486 = shalt.err (!%p1483_p12)
}
 0x111   : > { %s1550_s10 = smov 64   ;;  %s1551_s23 = smov 4  }
 0x112   : > { %1326 = dma.vmem_to_hbm [thread:$0]  (%p1658_p3), %s932_s18, 2048, %s934_s28, %s918_s29, %s1550_s10, %s1550_s10, %s1551_s23  }
 0x113 PF: > { %p1343_p13 = scmp.ge.s32.totalorder %s1545_s20, 2  ;;  %s948_s25 = sand.u32 1, %s1525_s15  }
 0x114   : > { %s949_s30 = scalar_lea.sflag [#allocation5], %s948_s25 }
 0x115   : > { %p1337_p0 = pnand %p1343_p13, %p1626_p6 }
 0x117   : > { %p1338_p5 = pneg %p1337_p0 }
 0x119   : > { %1520 = dma.done.wait (%p1338_p5), %s949_s30, 2048  }
 0x11a   : > { %1522 = vsyncadd (%p1338_p5), %s949_s30, 4294965248  ;;  %s21_s20 = sadd.s32 1, %s1545_s20   ;;  %s1865_s12 = sld [smem:[#allocation12_spill]] }
 0x11b   : > { %p18_p7 = scmp.ge.s32.totalorder %s21_s20, 10   ;;  %s1866_s15 = smov %s1529_s16 }
 0x11c   : > { %s1867_s16 = smov %s1533_s17  ;;  %s1868_s17 = smov %s1667_s22 }
 0x11d   : > { %s1869_s18 = smov %s1541_s19  ;;  %20 = sbr.rel (!%p18_p7) target bundleno = 9 (0x9), region = 100 }
 0x120   : > { %s1870_s19 = smov %s1865_s12 }
 0x122   :  { %955 = vsyncpa [#allocation4], 1 }
 0x123   :  { %957 = vsyncpa [#allocation4 + $0x1], 1 }
 0x124   :  { %958 = vsyncpa [#allocation7], 1 }
 0x125   :  { %959 = vsyncpa [#allocation5], 1 }
 0x126   :  { %961 = vsyncpa [#allocation5 + $0x1], 1 }

</bundles_post_ra>
